<compile_context>
chip_gen: v7x
topology: tpu7x:2x2x1
jax: 0.10.0
libtpu: 0.0.40
codegen_flags: <defaults>
</compile_context>

<pallas_src>
import jax
import jax.numpy as jnp
from jax.experimental import pallas as pl
from jax.experimental.pallas import tpu as pltpu


def _round_up(x, n):
    return (x + n - 1) // n * n


def netg_kernel(x_ref, z_ref, m_ref,
                w1_ref, b1_ref,
                w2_ref, b2_ref,
                w3_ref, b3_ref,
                o_ref):
    x = x_ref[...]
    z = z_ref[...]
    m = m_ref[...]

    # inp = m*x + (1-m)*z, rewritten as z + m*(x - z): one fewer VPU multiply.
    inp = z + m * (x - z)

    # concat([inp, m], axis=1) done in-kernel so fc1 is one K=2*Dim matmul
    # instead of two K=Dim matmuls (full MXU K occupancy, half the weight pushes).
    cat = jnp.concatenate([inp, m], axis=-1).astype(jnp.bfloat16)

    # fc1 + ReLU
    h1 = jnp.dot(cat, w1_ref[...], preferred_element_type=jnp.float32) + b1_ref[...]
    h1 = jnp.maximum(h1, 0.0)

    # fc2 + ReLU
    h2 = jnp.dot(h1.astype(jnp.bfloat16), w2_ref[...],
                 preferred_element_type=jnp.float32) + b2_ref[...]
    h2 = jnp.maximum(h2, 0.0)

    # fc3 + sigmoid (output block is lane-padded; padding sliced off in the wrapper)
    h3 = jnp.dot(h2.astype(jnp.bfloat16), w3_ref[...],
                 preferred_element_type=jnp.float32) + b3_ref[...]
    o_ref[...] = jax.nn.sigmoid(h3).astype(o_ref.dtype)


def netg_forward(x, z, m, params, *, tile_b=512):
    """x, z, m: (B, Dim) float32. params: f32 weights pre-transposed to (in, out)."""
    B, dim = x.shape
    dim_p = _round_up(dim, 128)                     # lane-dense output slab
    tile_b = min(tile_b, _round_up(B, 8))           # small-B friendly, sublane aligned
    Bp = _round_up(B, tile_b)

    if Bp != B:
        pad = ((0, Bp - B), (0, 0))
        x = jnp.pad(x, pad)
        z = jnp.pad(z, pad)
        m = jnp.pad(m, pad)

    # bf16 weights for the MXU (halves weight DMA); biases stay f32 and are added
    # into the f32 accumulator.  w3/b3 are zero-padded to the lane-dense width.
    w1 = params["w1"].astype(jnp.bfloat16)                                  # (2*Dim, 256)
    w2 = params["w2"].astype(jnp.bfloat16)                                  # (256, 128)
    w3 = jnp.pad(params["w3"], ((0, 0), (0, dim_p - dim))).astype(jnp.bfloat16)  # (128, dim_p)
    b1 = params["b1"]                                                        # (1, 256)
    b2 = params["b2"]                                                        # (1, 128)
    b3 = jnp.pad(params["b3"], ((0, 0), (0, dim_p - dim)))                   # (1, dim_p)

    grid = (Bp // tile_b,)

    def row_spec(shape):
        return pl.BlockSpec(shape, lambda i: (i, 0))

    def const_spec(shape):
        return pl.BlockSpec(shape, lambda i: (0, 0))      # stays resident across the grid

    out = pl.pallas_call(
        netg_kernel,
        out_shape=jax.ShapeDtypeStruct((Bp, dim_p), jnp.float32),
        grid=grid,
        in_specs=[
            row_spec((tile_b, dim)),       # x
            row_spec((tile_b, dim)),       # z
            row_spec((tile_b, dim)),       # m
            const_spec(w1.shape), const_spec(b1.shape),
            const_spec(w2.shape), const_spec(b2.shape),
            const_spec(w3.shape), const_spec(b3.shape),
        ],
        out_specs=row_spec((tile_b, dim_p)),
        compiler_params=pltpu.CompilerParams(
            dimension_semantics=("parallel",)),            # 2 TCs on v7x
    )(x, z, m, w1, b1, w2, b2, w3, b3)

    return out[:B, :dim]


def init_params(key, dim):
    """Matches NetG.__init__: weights ~ xavier_normal, biases ~ default Linear
       init U(-1/sqrt(fan_in), 1/sqrt(fan_in)).  Weights stored pre-transposed
       as (in, out) so the kernel does activation @ weight."""
    def xavier_normal(k, fan_in, fan_out):
        std = (2.0 / (fan_in + fan_out)) ** 0.5
        return std * jax.random.normal(k, (fan_in, fan_out), dtype=jnp.float32)

    def bias(k, fan_in, fan_out):
        bound = 1.0 / (fan_in ** 0.5)
        return jax.random.uniform(k, (1, fan_out), dtype=jnp.float32,
                                  minval=-bound, maxval=bound)

    ks = jax.random.split(key, 6)
    return {
        "w1": xavier_normal(ks[0], 2 * dim, 256),
        "b1": bias(ks[1], 2 * dim, 256),
        "w2": xavier_normal(ks[2], 256, 128),
        "b2": bias(ks[3], 256, 128),
        "w3": xavier_normal(ks[4], 128, dim),
        "b3": bias(ks[5], 128, dim),
    }


def netg_reference(x, z, m, params):
    """Plain-JAX f32 reference for sanity checking the kernel."""
    inp = m * x + (1.0 - m) * z
    full_inp = jnp.concatenate([inp, m], axis=1)
    h1 = jax.nn.relu(full_inp @ params["w1"] + params["b1"])
    h2 = jax.nn.relu(h1 @ params["w2"] + params["b2"])
    return jax.nn.sigmoid(h2 @ params["w3"] + params["b3"])


if __name__ == "__main__":
    Dim = 64
    B = 8

    key = jax.random.PRNGKey(0)
    k_params, k_x, k_z, k_m = jax.random.split(key, 4)

    params = init_params(k_params, Dim)
    x = jax.random.normal(k_x, (B, Dim), dtype=jnp.float32)
    z = jax.random.normal(k_z, (B, Dim), dtype=jnp.float32)
    m = (jax.random.uniform(k_m, (B, Dim)) > 0.5).astype(jnp.float32)

    out = netg_forward(x, z, m, params)
    out = jax.block_until_ready(out)

    ref = netg_reference(x, z, m, params)
    assert out.shape == (B, Dim)
    # bf16 matmul inputs vs f32 reference -> loosened tolerance.
    assert jnp.allclose(out, ref, atol=2e-2, rtol=2e-2), "mismatch vs reference"

    print("KERNEL_OK")
</pallas_src>

<mosaic_0001>
module attributes {stable_mosaic.version = 11 : i64} {
  func.func @netg_kernel(%arg0: i32, %arg1: memref<8x64xf32, #tpu.memory_space<vmem>>, %arg2: memref<8x64xf32, #tpu.memory_space<vmem>>, %arg3: memref<8x64xf32, #tpu.memory_space<vmem>>, %arg4: memref<128x256xbf16, #tpu.memory_space<vmem>>, %arg5: memref<1x256xf32, #tpu.memory_space<vmem>>, %arg6: memref<256x128xbf16, #tpu.memory_space<vmem>>, %arg7: memref<1x128xf32, #tpu.memory_space<vmem>>, %arg8: memref<128x128xbf16, #tpu.memory_space<vmem>>, %arg9: memref<1x128xf32, #tpu.memory_space<vmem>>, %arg10: memref<8x128xf32, #tpu.memory_space<vmem>>) attributes {dimension_semantics = [#tpu.dimension_semantics<parallel>], iteration_bounds = array<i64: 1>, scalar_prefetch = 0 : i64, scratch_operands = 0 : i64, tpu.core_type = #tpu.core_type<tc>, window_params = [{transform_indices = @transform_0, window_bounds = array<i64: 8, 64>}, {transform_indices = @transform_1, window_bounds = array<i64: 8, 64>}, {transform_indices = @transform_2, window_bounds = array<i64: 8, 64>}, {pipeline_mode = #tpu.pipeline_mode<synchronous>, transform_indices = @transform_3, window_bounds = array<i64: 128, 256>}, {pipeline_mode = #tpu.pipeline_mode<synchronous>, transform_indices = @transform_4, window_bounds = array<i64: 1, 256>}, {pipeline_mode = #tpu.pipeline_mode<synchronous>, transform_indices = @transform_5, window_bounds = array<i64: 256, 128>}, {pipeline_mode = #tpu.pipeline_mode<synchronous>, transform_indices = @transform_6, window_bounds = array<i64: 1, 128>}, {pipeline_mode = #tpu.pipeline_mode<synchronous>, transform_indices = @transform_7, window_bounds = array<i64: 128, 128>}, {pipeline_mode = #tpu.pipeline_mode<synchronous>, transform_indices = @transform_8, window_bounds = array<i64: 1, 128>}, {transform_indices = @transform_9, window_bounds = array<i64: 8, 128>}]} {
    %c0 = arith.constant 0 : index
    %c0_0 = arith.constant 0 : index
    %0 = vector.load %arg1[%c0, %c0_0] : memref<8x64xf32, #tpu.memory_space<vmem>>, vector<8x64xf32>
    %c0_1 = arith.constant 0 : index
    %c0_2 = arith.constant 0 : index
    %1 = vector.load %arg2[%c0_1, %c0_2] : memref<8x64xf32, #tpu.memory_space<vmem>>, vector<8x64xf32>
    %c0_3 = arith.constant 0 : index
    %c0_4 = arith.constant 0 : index
    %2 = vector.load %arg3[%c0_3, %c0_4] : memref<8x64xf32, #tpu.memory_space<vmem>>, vector<8x64xf32>
    %3 = arith.subf %0, %1 : vector<8x64xf32>
    %4 = arith.mulf %2, %3 : vector<8x64xf32>
    %5 = arith.addf %1, %4 : vector<8x64xf32>
    %6 = tpu.concatenate %5, %2 in 1 : vector<8x64xf32>, vector<8x64xf32> -> vector<8x128xf32>
    %7 = arith.truncf %6 : vector<8x128xf32> to vector<8x128xbf16>
    %c0_5 = arith.constant 0 : index
    %c0_6 = arith.constant 0 : index
    %8 = vector.load %arg4[%c0_5, %c0_6] : memref<128x256xbf16, #tpu.memory_space<vmem>>, vector<128x256xbf16>
    %cst = arith.constant dense<0.000000e+00> : vector<8x256xf32>
    %9 = tpu.matmul %7, %8, %cst {dimension_numbers = #tpu.dot_dimension_numbers<[1], [0], [0], [1], [0, 0, 1, 1], [], []>} : vector<8x128xbf16>, vector<128x256xbf16>, vector<8x256xf32> -> vector<8x256xf32>
    %c0_7 = arith.constant 0 : index
    %c0_8 = arith.constant 0 : index
    %10 = vector.load %arg5[%c0_7, %c0_8] : memref<1x256xf32, #tpu.memory_space<vmem>>, vector<1x256xf32>
    %11 = vector.broadcast %10 : vector<1x256xf32> to vector<8x256xf32>
    %12 = arith.addf %9, %11 : vector<8x256xf32>
    %cst_9 = arith.constant 0.000000e+00 : f32
    %13 = vector.broadcast %cst_9 : f32 to vector<8x256xf32>
    %14 = arith.maximumf %12, %13 : vector<8x256xf32>
    %15 = arith.truncf %14 : vector<8x256xf32> to vector<8x256xbf16>
    %c0_10 = arith.constant 0 : index
    %c0_11 = arith.constant 0 : index
    %16 = vector.load %arg6[%c0_10, %c0_11] : memref<256x128xbf16, #tpu.memory_space<vmem>>, vector<256x128xbf16>
    %cst_12 = arith.constant dense<0.000000e+00> : vector<8x128xf32>
    %17 = tpu.matmul %15, %16, %cst_12 {dimension_numbers = #tpu.dot_dimension_numbers<[1], [0], [0], [1], [0, 0, 1, 1], [], []>} : vector<8x256xbf16>, vector<256x128xbf16>, vector<8x128xf32> -> vector<8x128xf32>
    %c0_13 = arith.constant 0 : index
    %c0_14 = arith.constant 0 : index
    %18 = vector.load %arg7[%c0_13, %c0_14] : memref<1x128xf32, #tpu.memory_space<vmem>>, vector<1x128xf32>
    %19 = vector.broadcast %18 : vector<1x128xf32> to vector<8x128xf32>
    %20 = arith.addf %17, %19 : vector<8x128xf32>
    %cst_15 = arith.constant 0.000000e+00 : f32
    %21 = vector.broadcast %cst_15 : f32 to vector<8x128xf32>
    %22 = arith.maximumf %20, %21 : vector<8x128xf32>
    %23 = arith.truncf %22 : vector<8x128xf32> to vector<8x128xbf16>
    %c0_16 = arith.constant 0 : index
    %c0_17 = arith.constant 0 : index
    %24 = vector.load %arg8[%c0_16, %c0_17] : memref<128x128xbf16, #tpu.memory_space<vmem>>, vector<128x128xbf16>
    %cst_18 = arith.constant dense<0.000000e+00> : vector<8x128xf32>
    %25 = tpu.matmul %23, %24, %cst_18 {dimension_numbers = #tpu.dot_dimension_numbers<[1], [0], [0], [1], [0, 0, 1, 1], [], []>} : vector<8x128xbf16>, vector<128x128xbf16>, vector<8x128xf32> -> vector<8x128xf32>
    %c0_19 = arith.constant 0 : index
    %c0_20 = arith.constant 0 : index
    %26 = vector.load %arg9[%c0_19, %c0_20] : memref<1x128xf32, #tpu.memory_space<vmem>>, vector<1x128xf32>
    %27 = vector.broadcast %26 : vector<1x128xf32> to vector<8x128xf32>
    %28 = arith.addf %25, %27 : vector<8x128xf32>
    %29 = arith.negf %28 : vector<8x128xf32>
    %30 = math.exp %29 : vector<8x128xf32>
    %cst_21 = arith.constant 1.000000e+00 : f32
    %31 = vector.broadcast %cst_21 : f32 to vector<8x128xf32>
    %32 = arith.addf %31, %30 : vector<8x128xf32>
    %33 = arith.divf %31, %32 : vector<8x128xf32>
    %c0_22 = arith.constant 0 : index
    %c0_23 = arith.constant 0 : index
    %34 = vector.load %arg10[%c0_22, %c0_23] : memref<8x128xf32, #tpu.memory_space<vmem>>, vector<8x128xf32>
    tpu.vector_store %arg10[%c0_22, %c0_23], %33 {strides = array<i32>} : memref<8x128xf32, #tpu.memory_space<vmem>>, vector<8x128xf32>,
    return
  }
  func.func @transform_0(%arg0: i32) -> (i32, i32) {
    %c0_i32 = arith.constant 0 : i32
    %c0_i32_0 = arith.constant 0 : i32
    return %arg0, %c0_i32 : i32, i32
  }
  func.func @transform_1(%arg0: i32) -> (i32, i32) {
    %c0_i32 = arith.constant 0 : i32
    %c0_i32_0 = arith.constant 0 : i32
    return %arg0, %c0_i32 : i32, i32
  }
  func.func @transform_2(%arg0: i32) -> (i32, i32) {
    %c0_i32 = arith.constant 0 : i32
    %c0_i32_0 = arith.constant 0 : i32
    return %arg0, %c0_i32 : i32, i32
  }
  func.func @transform_3(%arg0: i32) -> (i32, i32) {
    %c0_i32 = arith.constant 0 : i32
    %c0_i32_0 = arith.constant 0 : i32
    %c0_i32_1 = arith.constant 0 : i32
    return %c0_i32, %c0_i32_0 : i32, i32
  }
  func.func @transform_4(%arg0: i32) -> (i32, i32) {
    %c0_i32 = arith.constant 0 : i32
    %c0_i32_0 = arith.constant 0 : i32
    %c0_i32_1 = arith.constant 0 : i32
    return %c0_i32, %c0_i32_0 : i32, i32
  }
  func.func @transform_5(%arg0: i32) -> (i32, i32) {
    %c0_i32 = arith.constant 0 : i32
    %c0_i32_0 = arith.constant 0 : i32
    %c0_i32_1 = arith.constant 0 : i32
    return %c0_i32, %c0_i32_0 : i32, i32
  }
  func.func @transform_6(%arg0: i32) -> (i32, i32) {
    %c0_i32 = arith.constant 0 : i32
    %c0_i32_0 = arith.constant 0 : i32
    %c0_i32_1 = arith.constant 0 : i32
    return %c0_i32, %c0_i32_0 : i32, i32
  }
  func.func @transform_7(%arg0: i32) -> (i32, i32) {
    %c0_i32 = arith.constant 0 : i32
    %c0_i32_0 = arith.constant 0 : i32
    %c0_i32_1 = arith.constant 0 : i32
    return %c0_i32, %c0_i32_0 : i32, i32
  }
  func.func @transform_8(%arg0: i32) -> (i32, i32) {
    %c0_i32 = arith.constant 0 : i32
    %c0_i32_0 = arith.constant 0 : i32
    %c0_i32_1 = arith.constant 0 : i32
    return %c0_i32, %c0_i32_0 : i32, i32
  }
  func.func @transform_9(%arg0: i32) -> (i32, i32) {
    %c0_i32 = arith.constant 0 : i32
    %c0_i32_0 = arith.constant 0 : i32
    return %arg0, %c0_i32 : i32, i32
  }
}

</mosaic_0001>

<bundles_post_ra>
// kernel: tpu_custom_call.1
= control target key start
LH: loop header
LB: loop body
LE: loop exit
PB: predicated region body
PF: predicated region fallthrough
CT: control target
= control target key end

     0   :  { %14 = vsyncpa [#allocation3], 0  ;;  %s1077_s0 = inlined_call_operand.hbm [shape: f32[8,64], index: 0, kind: input, shape index: {}]   ;;  %s1078_s1 = inlined_call_operand.hbm [shape: f32[8,64], index: 1, kind: input, shape index: {}]   ;;  %s1079_s2 = inlined_call_operand.hbm [shape: f32[8,64], index: 2, kind: input, shape index: {}]   ;;  %s1080_s3 = inlined_call_operand.hbm [shape: bf16[128,256], index: 3, kind: input, shape index: {}]   ;;  %s1081_s4 = inlined_call_operand.vmem [shape: f32[1,256], index: 4, kind: input, shape index: {}]   ;;  %s1082_s5 = inlined_call_operand.hbm [shape: bf16[256,128], index: 5, kind: input, shape index: {}]   ;;  %s1083_s6 = inlined_call_operand.vmem [shape: f32[1,128], index: 6, kind: input, shape index: {}]   ;;  %s1084_s7 = inlined_call_operand.hbm [shape: bf16[128,128], index: 7, kind: input, shape index: {}]   ;;  %s1085_s8 = inlined_call_operand.vmem [shape: f32[1,128], index: 8, kind: input, shape index: {}]   ;;  %s1086_s9 = inlined_call_operand.hbm [shape: f32[8,128], index: 9, kind: output, shape index: {}]  }
   0x1   :  { %15 = vsyncpa [#allocation6], 0 }
   0x2   :  { %16 = vsyncpa [#allocation9], 0 }
   0x3   :  { %17 = vsyncpa [#allocation12], 0 }
   0x4   :  { %18 = vsyncpa [#allocation4], 0  ;;  %s913_s30 = smov [#allocation5]   ;;  %s914_s11 = smov [#allocation8]  }
   0x5   :  { %s35_s10 = sshll.u32 %s913_s30, 4  ;;  %s54_s12 = sshll.u32 %s914_s11, 4  ;;  %s36_s10 = int_to_ptr.vmem [resolvable:$true] %s35_s10  ;;  %s977_s12 = int_to_ptr.vmem [resolvable:$true] %s54_s12 }
   0x6   :  { %s749_s15 = scalar_lea.hbm %s1078_s1, 128 }
   0x7   :  { %p750_p0 = scmp.ne.s32.totalorder %s1078_s1, %s749_s15  ;;  %p753_p1 = scmp.lt.u32.totalorder %s749_s15, %s1078_s1 }
   0x9   :  { %p755_p2 = pnand %p753_p1, %p750_p0 }
   0xb   :  { %758 = shalt.err (!%p755_p2)
}
   0xc   :  { %s759_s20 = scalar_lea.vmem %s36_s10, 128  ;;  %p764_p4 = scmp.lt.s32.totalorder %s36_s10, %s36_s10 }
   0xd   :  { %p760_p3 = scmp.ne.s32.totalorder %s36_s10, %s759_s20  ;;  %p765_p5 = scmp.lt.s32.totalorder %s759_s20, %s759_s20 }
   0xf   :  { %p766_p6 = por %p765_p5, %p764_p4 }
  0x11   :  { %p767_p7 = pnand %p766_p6, %p760_p3 }
  0x13   :  { %770 = shalt.err (!%p767_p7)
}
  0x14   :  { %38 = dma.hbm_to_vmem [thread:$0]  %s1078_s1, 128, %s36_s10, [#allocation6]  }
  0x15   :  { %s771_s25 = scalar_lea.hbm %s1080_s3, 2048 }
  0x16   :  { %p772_p8 = scmp.ne.s32.totalorder %s1080_s3, %s771_s25  ;;  %p775_p9 = scmp.lt.u32.totalorder %s771_s25, %s1080_s3 }
  0x18   :  { %p777_p10 = pnand %p775_p9, %p772_p8 }
  0x1a   :  { %780 = shalt.err (!%p777_p10)
}
  0x1b   :  { %s781_s30 = scalar_lea.vmem %s977_s12, 2048  ;;  %p786_p12 = scmp.lt.s32.totalorder %s977_s12, %s977_s12 }
  0x1c   :  { %p782_p11 = scmp.ne.s32.totalorder %s977_s12, %s781_s30  ;;  %p787_p13 = scmp.lt.s32.totalorder %s781_s30, %s781_s30 }
  0x1e   :  { %p788_p0 = por %p787_p13, %p786_p12 }
  0x20   :  { %p789_p1 = pnand %p788_p0, %p782_p11 }
  0x22   :  { %792 = shalt.err (!%p789_p1)
}
  0x23   :  { %s915_s1 = smov 128   ;;  %s916_s10 = smov 8  }
  0x24   :  { %60 = dma.hbm_to_vmem [thread:$0]  %s1080_s3, 2048, %s977_s12, [#allocation9], %s915_s1, %s915_s1, %s916_s10  }
  0x25   :  { %s917_s14 = smov [#allocation2]   ;;  %s918_s16 = smov [#allocation7]  }
  0x26   :  { %s25_s15 = sshll.u32 %s917_s14, 4  ;;  %s45_s17 = sshll.u32 %s918_s16, 4  ;;  %s26_s15 = int_to_ptr.vmem [resolvable:$true] %s25_s15  ;;  %s46_s17 = int_to_ptr.vmem [resolvable:$true] %s45_s17 }
  0x27   :  { %s793_s20 = scalar_lea.hbm %s1077_s0, 128 }
  0x28   :  { %p794_p2 = scmp.ne.s32.totalorder %s1077_s0, %s793_s20  ;;  %p797_p3 = scmp.lt.u32.totalorder %s793_s20, %s1077_s0 }
  0x2a   :  { %p799_p4 = pnand %p797_p3, %p794_p2 }
  0x2c   :  { %802 = shalt.err (!%p799_p4)
}
  0x2d   :  { %s803_s3 = scalar_lea.vmem %s26_s15, 128  ;;  %p808_p6 = scmp.lt.s32.totalorder %s26_s15, %s26_s15 }
  0x2e   :  { %p804_p5 = scmp.ne.s32.totalorder %s26_s15, %s803_s3  ;;  %p809_p7 = scmp.lt.s32.totalorder %s803_s3, %s803_s3 }
  0x30   :  { %p810_p8 = por %p809_p7, %p808_p6 }
  0x32   :  { %p811_p9 = pnand %p810_p8, %p804_p5 }
  0x34   :  { %814 = shalt.err (!%p811_p9)
}
  0x35   :  { %28 = dma.hbm_to_vmem [thread:$0]  %s1077_s0, 128, %s26_s15, [#allocation3]  }
  0x36   :  { %s815_s28 = scalar_lea.hbm %s1079_s2, 128 }
  0x37   :  { %p816_p10 = scmp.ne.s32.totalorder %s1079_s2, %s815_s28  ;;  %p819_p11 = scmp.lt.u32.totalorder %s815_s28, %s1079_s2 }
  0x39   :  { %p821_p12 = pnand %p819_p11, %p816_p10 }
  0x3b   :  { %824 = shalt.err (!%p821_p12)
}
  0x3c   :  { %s825_s11 = scalar_lea.vmem %s46_s17, 128  ;;  %p830_p0 = scmp.lt.s32.totalorder %s46_s17, %s46_s17 }
  0x3d   :  { %p826_p13 = scmp.ne.s32.totalorder %s46_s17, %s825_s11  ;;  %p831_p1 = scmp.lt.s32.totalorder %s825_s11, %s825_s11 }
  0x3f   :  { %p832_p2 = por %p831_p1, %p830_p0 }
  0x41   :  { %p833_p3 = pnand %p832_p2, %p826_p13 }
  0x43   :  { %836 = shalt.err (!%p833_p3)
}
  0x44   :  { %48 = dma.hbm_to_vmem [thread:$0]  %s1079_s2, 128, %s46_s17, [#allocation6]  }
  0x45   :  { %s919_s14 = smov [#allocation10]   ;;  %s837_s19 = scalar_lea.hbm %s1082_s5, 2048 }
  0x46   :  { %s68_s15 = sshll.u32 %s919_s14, 4  ;;  %p838_p4 = scmp.ne.s32.totalorder %s1082_s5, %s837_s19  ;;  %s69_s15 = int_to_ptr.vmem [resolvable:$true] %s68_s15 }
  0x47   :  { %p841_p5 = scmp.lt.u32.totalorder %s837_s19, %s1082_s5 }
  0x49   :  { %p843_p6 = pnand %p841_p5, %p838_p4 }
  0x4b   :  { %846 = shalt.err (!%p843_p6)
}
  0x4c   :  { %s847_s24 = scalar_lea.vmem %s69_s15, 2048  ;;  %p852_p8 = scmp.lt.s32.totalorder %s69_s15, %s69_s15 }
  0x4d   :  { %p848_p7 = scmp.ne.s32.totalorder %s69_s15, %s847_s24  ;;  %p853_p9 = scmp.lt.s32.totalorder %s847_s24, %s847_s24 }
  0x4f   :  { %p854_p10 = por %p853_p9, %p852_p8 }
  0x51   :  { %p855_p11 = pnand %p854_p10, %p848_p7 }
  0x53   :  { %858 = shalt.err (!%p855_p11)
}
  0x54   :  { %s920_s2 = smov 64   ;;  %s921_s17 = smov 4  }
  0x55   :  { %74 = dma.hbm_to_vmem [thread:$0]  %s1082_s5, 2048, %s69_s15, [#allocation9], %s920_s2, %s920_s2, %s921_s17  }
  0x56   :  { %s922_s25 = smov [#allocation11]   ;;  %s859_s29 = scalar_lea.hbm %s1084_s7, 1024 }
  0x57   :  { %s82_s26 = sshll.u32 %s922_s25, 4  ;;  %p860_p12 = scmp.ne.s32.totalorder %s1084_s7, %s859_s29  ;;  %s83_s26 = int_to_ptr.vmem [resolvable:$true] %s82_s26 }
  0x58   :  { %p863_p13 = scmp.lt.u32.totalorder %s859_s29, %s1084_s7 }
  0x5a   :  { %p865_p0 = pnand %p863_p13, %p860_p12 }
  0x5c   :  { %868 = shalt.err (!%p865_p0)
}
  0x5d   :  { %s869_s0 = scalar_lea.vmem %s83_s26, 1024  ;;  %p874_p2 = scmp.lt.s32.totalorder %s83_s26, %s83_s26 }
  0x5e   :  { %p870_p1 = scmp.ne.s32.totalorder %s83_s26, %s869_s0  ;;  %p875_p3 = scmp.lt.s32.totalorder %s869_s0, %s869_s0 }
  0x60   :  { %p876_p4 = por %p875_p3, %p874_p2 }
  0x62   :  { %p877_p5 = pnand %p876_p4, %p870_p1 }
  0x64   :  { %880 = shalt.err (!%p877_p5)
}
  0x65   :  { %88 = dma.hbm_to_vmem [thread:$0]  %s1084_s7, 1024, %s83_s26, [#allocation12], %s920_s2, %s920_s2, %s921_s17  }
  0x66   :  { %903 = dma.done.wait [#allocation3], 128  }
  0x67   :  { %904 = vsyncadd [#allocation3], 4294967168 }
  0x68   :  { %905 = dma.done.wait [#allocation6], 256  }
  0x69   :  { %906 = vsyncadd [#allocation6], 4294967040 }
  0x6a   :  { %907 = dma.done.wait [#allocation9], 4096  }
  0x6b   :  { %908 = vsyncadd [#allocation9], 4294963200 }
  0x6c   :  { %909 = dma.done.wait [#allocation12], 1024  }
  0x6d   :  { %910 = vsyncadd [#allocation12], 4294966272  ;;  %v923_v0 = vmov 0   ;;  %v112_v1 = vld [vmem:[#allocation7] sm:$0xff]  ;;  %v697_v2 = vld [vmem:[#allocation8 + $0x4] ss:$8 sps:$4 sm:$0xff]   ;;  %v141_v49 = vlaneseq }
  0x6e   :  { %263 = vmatprep.mubr.bf16.mxu0 %v923_v0  ;;  %117 = vrot.lane.b32.xlu0 %v112_v1, %s920_s2  ;;  %v699_v3 = vld [vmem:[#allocation8] ss:$8 sps:$4 sm:$0xff]   ;;  %v700_v4 = vld [vmem:[#allocation8 + $0x14] ss:$8 sps:$4 sm:$0xff]   ;;  %v702_v5 = vld [vmem:[#allocation8 + $0x10] ss:$8 sps:$4 sm:$0xff]  }
  0x6f   :  { %231 = vmatprep.subr.bf16.mxu0 %v697_v2  ;;  %v703_v6 = vld [vmem:[#allocation8 + $0x24] ss:$8 sps:$4 sm:$0xff]   ;;  %v705_v7 = vld [vmem:[#allocation8 + $0x20] ss:$8 sps:$4 sm:$0xff]   ;;  %v706_v8 = vld [vmem:[#allocation8 + $0x34] ss:$8 sps:$4 sm:$0xff]  }
  0x70   :  { %232 = vmatpush1.bf16.msra.mxu0 %v699_v3  ;;  %v708_v9 = vld [vmem:[#allocation8 + $0x30] ss:$8 sps:$4 sm:$0xff]   ;;  %v709_v10 = vld [vmem:[#allocation8 + $0x44] ss:$8 sps:$4 sm:$0xff]   ;;  %v711_v13 = vld [vmem:[#allocation8 + $0x40] ss:$8 sps:$4 sm:$0xff]  }
  0x71   :  { %233 = vmatprep.subr.bf16.mxu0 %v700_v4  ;;  %v721_v11 = vld [vmem:[#allocation10 + $0x40] sm:$0xff]   ;;  %v723_v14 = vld [vmem:[#allocation10 + $0x48] sm:$0xff]   ;;  %v725_v16 = vld [vmem:[#allocation10 + $0x50] sm:$0xff]   ;;  %vm120_vm0 = vcmask 523264   ;;  %v924_v43 = vmov 0.0   ;;  %v142_v50 = vshrl.u32 %v141_v49, 7 }
  0x72   :  { %v722_v12 = vld [vmem:[#allocation10] sm:$0xff]   ;;  %632 = vmatprep.subr.bf16.mxu1 %v721_v11  ;;  %v724_v15 = vld [vmem:[#allocation10 + $0x8] sm:$0xff]   ;;  %v712_v17 = vld [vmem:[#allocation8 + $0x54] ss:$8 sps:$4 sm:$0xff]   ;;  %vm925_vm1 = vmmov 0  }
  0x73   :  { %633 = vmatpush3.bf16.msra.mxu1 %v722_v12  ;;  %v714_v18 = vld [vmem:[#allocation8 + $0x50] ss:$8 sps:$4 sm:$0xff]   ;;  %v715_v21 = vld [vmem:[#allocation8 + $0x64] ss:$8 sps:$4 sm:$0xff]   ;;  %v717_v22 = vld [vmem:[#allocation8 + $0x60] ss:$8 sps:$4 sm:$0xff]  }
  0x74   :  { %234 = vmatpush1.bf16.msra.mxu0 %v702_v5  ;;  %634 = vmatprep.subr.bf16.mxu1 %v723_v14  ;;  %v726_v19 = vld [vmem:[#allocation10 + $0x10] sm:$0xff]   ;;  %v727_v20 = vld [vmem:[#allocation10 + $0x58] sm:$0xff]   ;;  %v729_v25 = vld [vmem:[#allocation10 + $0x60] sm:$0xff]   ;;  %v143_v51 = vsub.s32 0, %v142_v50  ;;  %v147_v53 = vsub.s32 1, %v142_v50 }
  0x75   :  { %235 = vmatprep.subr.bf16.mxu0 %v703_v6  ;;  %v718_v23 = vld [vmem:[#allocation8 + $0x74] ss:$8 sps:$4 sm:$0xff]   ;;  %v730_v26 = vld [vmem:[#allocation10 + $0x20] sm:$0xff]   ;;  %v720_v27 = vld [vmem:[#allocation8 + $0x70] ss:$8 sps:$4 sm:$0xff]  }
  0x76   :  { %v728_v24 = vld [vmem:[#allocation10 + $0x18] sm:$0xff]   ;;  %v731_v28 = vld [vmem:[#allocation10 + $0x68] sm:$0xff]   ;;  %v111_v31 = vld [vmem:[#allocation5] sm:$0xff] }
  0x77   :  { %635 = vmatpush3.bf16.msra.mxu1 %v724_v15  ;;  %v732_v29 = vld [vmem:[#allocation10 + $0x28] sm:$0xff]   ;;  %v733_v38 = vld [vmem:[#allocation10 + $0x70] sm:$0xff]   ;;  %v735_v40 = vld [vmem:[#allocation10 + $0x78] sm:$0xff]  }
  0x78   :  { %236 = vmatpush1.bf16.msra.mxu0 %v705_v7  ;;  %636 = vmatprep.subr.bf16.mxu1 %v725_v16  ;;  %v110_v30 = vld [vmem:[#allocation2] sm:$0xff]  ;;  %v734_v39 = vld [vmem:[#allocation10 + $0x30] sm:$0xff]   ;;  %v736_v41 = vld [vmem:[#allocation10 + $0x38] sm:$0xff]  }
  0x79   :  { %237 = vmatprep.subr.bf16.mxu0 %v706_v8  ;;  %v113_v32 = vsub.f32 %v110_v30, %v111_v31  ;;  %v737_v42 = vld [vmem:[#allocation11] sm:$0xff]   ;;  %v738_v44 = vld [vmem:[#allocation11 + $0x8] sm:$0xff]   ;;  %v739_v45 = vld [vmem:[#allocation11 + $0x10] sm:$0xff]  }
  0x7a   :  { %v740_v46 = vld [vmem:[#allocation11 + $0x18] sm:$0xff]   ;;  %v741_v47 = vld [vmem:[#allocation11 + $0x20] sm:$0xff]   ;;  %v742_v48 = vld [vmem:[#allocation11 + $0x28] sm:$0xff]  }
  0x7b   :  { %637 = vmatpush3.bf16.msra.mxu1 %v726_v19  ;;  %v114_v33 = vmul.f32 %v113_v32, %v112_v1  ;;  %v139_v52 = vld [vmem:[%s1081_s4] sm:$0x3]  ;;  %v743_v2 = vld [vmem:[#allocation11 + $0x30] sm:$0xff]   ;;  %v744_v3 = vld [vmem:[#allocation11 + $0x38] sm:$0xff]  }
  0x7c   :  { %238 = vmatpush1.bf16.msra.mxu0 %v708_v9  ;;  %638 = vmatprep.subr.bf16.mxu1 %v727_v20  ;;  %v144_v54 = vrot.slane %v139_v52, %v143_v51  ;;  %v148_v55 = vrot.slane %v139_v52, %v147_v53  ;;  %v605_v5 = vld [vmem:[%s1083_s6] ss:$0 sm:$0xff]  ;;  %s926_s6 = smov [#allocation13]  }
  0x7d   :  { %239 = vmatprep.subr.bf16.mxu0 %v709_v10  ;;  %v115_v34 = vadd.f32 %v114_v33, %v111_v31  ;;  %s577_s19 = sshll.u32 %s926_s6, 4  ;;  %s578_s19 = int_to_ptr.vmem [resolvable:$true] %s577_s19 }
  0x7e   :  { %s881_s20 = scalar_lea.vmem %s578_s19, 128  ;;  %p886_p7 = scmp.lt.s32.totalorder %s578_s19, %s578_s19 }
  0x7f   :  { %639 = vmatpush3.bf16.msra.mxu1 %v728_v24  ;;  %p882_p6 = scmp.ne.s32.totalorder %s578_s19, %s881_s20  ;;  %p887_p8 = scmp.lt.s32.totalorder %s881_s20, %s881_s20 }
  0x80   :  { %240 = vmatpush1.bf16.msra.mxu0 %v711_v13  ;;  %640 = vmatprep.subr.bf16.mxu1 %v729_v25  ;;  %v622_v13 = vld [vmem:[%s1085_s8] ss:$0 sm:$0xff] }
  0x81   :  { %241 = vmatprep.subr.bf16.mxu0 %v712_v17  ;;  %p888_p9 = por %p887_p8, %p886_p7 }
  0x83   :  { %641 = vmatpush3.bf16.msra.mxu1 %v730_v26  ;;  %p889_p10 = pnand %p888_p9, %p882_p6 }
  0x84   :  { %242 = vmatpush1.bf16.msra.mxu0 %v714_v18  ;;  %642 = vmatprep.subr.bf16.mxu1 %v731_v28 }
  0x85   :  { %243 = vmatprep.subr.bf16.mxu0 %v715_v21 }
  0x87   :  { %643 = vmatpush3.bf16.msra.mxu1 %v732_v29 }
  0x88   :  { %244 = vmatpush1.bf16.msra.mxu0 %v717_v22  ;;  %644 = vmatprep.subr.bf16.mxu1 %v733_v38 }
  0x89   :  { %245 = vmatprep.subr.bf16.mxu0 %v718_v23 }
  0x8b   :  { %645 = vmatpush3.bf16.msra.mxu1 %v734_v39 }
  0x8c   :  { %246 = vmatpush1.bf16.msra.mxu0 %v720_v27  ;;  %646 = vmatprep.subr.bf16.mxu1 %v735_v40 }
  0x8d   :  { %663 = vmatprep.subr.bf16.mxu0 %v924_v43 }
  0x8f   :  { %647 = vmatpush3.bf16.msra.mxu1 %v736_v41 }
  0xe0   :  { %v118_v35 = vpop.permute.xlu0 %117 }
  0xe1   :  { %v121_v36 = vsel %vm120_vm0, %v115_v34, %v118_v35 }
  0xe2   :  { %v122_v37 = vpack.c.bf16 %v121_v36, %v121_v36 }
  0xe4   :  { %264 = vmatmul.mubr.bf16.vlgmr.msra.gmra.mrb[0].mxu0 %v122_v37 }
  0xe5   :  { %664 = vmatpush3.bf16.msra.mxu0 %v737_v42  ;;  %679 = vmatprep.mubr.msk.bf16.mxu0 %vm925_vm1, %v924_v43 }
  0xe6   :  { %665 = vmatprep.subr.bf16.mxu0 %v924_v43 }
  0xe9   :  { %666 = vmatpush3.bf16.msra.mxu0 %v738_v44 }
  0xea   :  { %667 = vmatprep.subr.bf16.mxu0 %v924_v43 }
  0xed   :  { %668 = vmatpush3.bf16.msra.mxu0 %v739_v45 }
  0xee   :  { %669 = vmatprep.subr.bf16.mxu0 %v924_v43 }
  0xf1   :  { %670 = vmatpush3.bf16.msra.mxu0 %v740_v46 }
  0xf2   :  { %671 = vmatprep.subr.bf16.mxu0 %v924_v43 }
  0xf5   :  { %672 = vmatpush3.bf16.msra.mxu0 %v741_v47 }
  0xf6   :  { %673 = vmatprep.subr.bf16.mxu0 %v924_v43 }
  0xf9   :  { %674 = vmatpush3.bf16.msra.mxu0 %v742_v48 }
  0xfa   :  { %675 = vmatprep.subr.bf16.mxu0 %v924_v43 }
  0xfd   :  { %676 = vmatpush3.bf16.msra.mxu0 %v743_v2 }
  0xfe   :  { %677 = vmatprep.subr.bf16.mxu0 %v924_v43 }
 0x101   :  { %678 = vmatpush3.bf16.msra.mxu0 %v744_v3 }
 0x1b7   :  { %v265_v56 = vpop.f32.mrb[0].mxu0 }
 0x1b8   :  { %v266_v57 = vadd.f32 %v265_v56, %v144_v54  ;;  %v267_v58 = vpop.f32.mrb[1].mxu0 }
 0x1b9   :  { %v268_v59 = vadd.f32 %v267_v58, %v148_v55  ;;  %v269_v60 = vpop.f32.mrb[2].mxu0 }
 0x1ba   :  { %v272_v61 = vmax.f32 %v266_v57, 0.0  ;;  %v270_v62 = vpop.f32.mrb[3].mxu0 }
 0x1bb   :  { %v273_v63 = vmax.f32 %v268_v59, 0.0 }
 0x1bc   :  { %v274_v1 = vpack.c.bf16 %v272_v61, %v272_v61 }
 0x1bd   :  { %v275_v0 = vpack.c.bf16 %v273_v63, %v273_v63 }
 0x1bf   :  { %443 = vmatprep.mubr.bf16.mxu1 %v275_v0 }
 0x1c0   :  { %444 = vmatmul.mubr.bf16.vlgmr.msra.gmra.mrb[0].mxu1 %v274_v1 }
 0x293   :  { %v648_v4 = vpop.f32.mrb[0].mxu1 }
 0x294   :  { %v649_v6 = vpop.f32.mrb[1].mxu1 }
 0x295   :  { %v650_v7 = vadd.f32 %v649_v6, %v648_v4  ;;  %v651_v8 = vpop.f32.mrb[2].mxu1 }
 0x296   :  { %v652_v9 = vpop.f32.mrb[3].mxu1 }
 0x297   :  { %v446_v10 = vadd.f32 %v650_v7, %v605_v5 }
 0x299   :  { %v451_v11 = vmax.f32 %v446_v10, 0.0 }
 0x29b   :  { %v452_v12 = vpack.c.bf16 %v451_v11, %v451_v11 }
 0x29d   :  { %680 = vmatmul.mubr.bf16.vlgmr.msra.gmra.mrb[4].mxu0 %v452_v12 }
 0x370   :  { %v558_v14 = vpop.f32.mrb[4].mxu0 }
 0x371   :  { %v559_v15 = vadd.f32 %v622_v13, %v558_v14  ;;  %v681_v16 = vpop.f32.mrb[5].mxu0 }
 0x372   :  { %v561_v17 = vpop.f32.mrb[6].mxu0 }
 0x373   :  { %v631_v18 = vmul.f32 -1.442695, %v559_v15  ;;  %v682_v19 = vpop.f32.mrb[7].mxu0 }
 0x375   :  { %745 = vpow2.f32 %v631_v18 }
 0x37f   :  { %v746_v20 = vpop.eup %745 }
 0x380   :  { %v567_v21 = vadd.f32 1.0, %v746_v20 }
 0x382   :  { %747 = vrcp.f32 %v567_v21 }
 0x38c   :  { %v748_v22 = vpop.eup %747 }
 0x38d   :  { %570 = vst [vmem:[#allocation13] sm:$0xff] %v748_v22 }
 0x38e   :  { %892 = shalt.err (!%p889_p10)
}
 0x38f   :  { %s893_s22 = scalar_lea.hbm %s1086_s9, 128 }
 0x390   :  { %p894_p11 = scmp.ne.s32.totalorder %s1086_s9, %s893_s22  ;;  %p897_p12 = scmp.lt.u32.totalorder %s893_s22, %s1086_s9 }
 0x392   :  { %p899_p13 = pnand %p897_p12, %p894_p11 }
 0x394   :  { %902 = shalt.err (!%p899_p13)
}
 0x395   :  { %580 = dma.vmem_to_hbm [thread:$0]  %s578_s19, 128, %s1086_s9, [#allocation4]  }
 0x396   :  { %911 = dma.done.wait [#allocation4], 128  }
 0x397   :  { %912 = vsyncadd [#allocation4], 4294967168 }
 0x398   :  { %584 = vsyncpa [#allocation3], 1 }
 0x399   :  { %585 = vsyncpa [#allocation6], 1 }
 0x39a   :  { %586 = vsyncpa [#allocation9], 1 }
 0x39b   :  { %587 = vsyncpa [#allocation12], 1 }
 0x39c   :  { %588 = vsyncpa [#allocation4], 1 }

</bundles_post_ra>
